<compile_context>
chip_gen: v5e
topology: v5e:2x2
jax: 0.10.0
libtpu: 0.0.40
codegen_flags: <defaults>
</compile_context>

<pallas_src>
import jax
import jax.numpy as jnp
from jax.experimental import pallas as pl
from jax.experimental.pallas import tpu as pltpu


def _round_up(n, m):
    return ((n + m - 1) // m) * m


def _mlp_kernel(x_ref,
                w1_ref, b1_ref,
                w2_ref, b2_ref,
                w3_ref, b3_ref,
                w4_ref, b4_ref,
                o_ref):
    # In-kernel f32 -> bf16 cast of the activations (VPU), then bf16 MXU
    # matmuls with f32 accumulation; bias add + ReLU stay in f32 on the VPU.
    x = x_ref[...].astype(jnp.bfloat16)

    # Layer 1 (+ ReLU; dropout1 == identity in eval)
    h = jnp.dot(x, w1_ref[...], preferred_element_type=jnp.float32)
    h = jnp.maximum(h + b1_ref[...], 0.0)

    # Layer 2 (+ ReLU; dropout2 == identity in eval)
    h = jnp.dot(h.astype(jnp.bfloat16), w2_ref[...],
                preferred_element_type=jnp.float32)
    h = jnp.maximum(h + b2_ref[...], 0.0)

    # Layer 3 (+ ReLU; dropout3 == identity in eval)
    h = jnp.dot(h.astype(jnp.bfloat16), w3_ref[...],
                preferred_element_type=jnp.float32)
    h = jnp.maximum(h + b3_ref[...], 0.0)

    # Layer 4 + final ReLU (FCNNSurv_time applies relu on the output head).
    # Lane-dense 128-wide bf16 store; padding lanes stay exactly 0.
    h = jnp.dot(h.astype(jnp.bfloat16), w4_ref[...],
                preferred_element_type=jnp.float32)
    o_ref[...] = jnp.maximum(h + b4_ref[...], 0.0).astype(o_ref.dtype)


def prepare_params(params):
    """One-time pad+cast of the parameters (call OUTSIDE the hot loop).

    params: dict with w1..w4 ([in, out]) and b1..b4 ([1, out]) f32 arrays
            (transpose of PyTorch nn.Linear weight layout).
    Returns a dict of lane-padded bf16 weights / f32 biases for the kernel.
    """
    F = params["w1"].shape[0]
    H1, H2, H3, D = (params[f"w{i}"].shape[1] for i in (1, 2, 3, 4))
    H1p, H2p, H3p, Dp = (_round_up(d, 128) for d in (H1, H2, H3, D))

    def pad_w(w, rows, cols):
        r, c = w.shape
        return jnp.pad(w, ((0, rows - r), (0, cols - c))).astype(jnp.bfloat16)

    def pad_b(b, cols):
        return jnp.pad(b, ((0, 0), (0, cols - b.shape[1]))).astype(jnp.float32)

    return {
        "w1": pad_w(params["w1"], F, H1p),   "b1": pad_b(params["b1"], H1p),
        "w2": pad_w(params["w2"], H1p, H2p), "b2": pad_b(params["b2"], H2p),
        "w3": pad_w(params["w3"], H2p, H3p), "b3": pad_b(params["b3"], H3p),
        "w4": pad_w(params["w4"], H3p, Dp),  "b4": pad_b(params["b4"], Dp),
    }


def fcnn_surv_time(x, prep, out_dim, *, tile_b=None):
    """FCNNSurv_time forward pass (eval mode) with a fused Pallas kernel.

    x:      [B, num_feat] float32 (NOT pre-cast; the kernel casts to bf16).
    prep:   output of prepare_params().
    out_dim: number of real output columns (num_diseases).
    """
    B, F = x.shape
    w1, b1 = prep["w1"], prep["b1"]
    w2, b2 = prep["w2"], prep["b2"]
    w3, b3 = prep["w3"], prep["b3"]
    w4, b4 = prep["w4"], prep["b4"]
    assert w1.shape[0] == F, "x feature dim must match prepared w1"
    H1p, H2p, H3p, Dp = w1.shape[1], w2.shape[1], w3.shape[1], w4.shape[1]

    # Batch tile: multiple of 16 (bf16 sublane pack).  Aim for >= 2 grid steps
    # when B allows (so v7x's two TensorCores both get work), with tiles up to
    # 1024 rows so the ~0.35us fixed cost per grid step is amortized on
    # single-TC v5e/v6e.  Per-step VMEM footprint is only a few MB.
    if tile_b is None:
        tile_b = min(1024, _round_up(pl.cdiv(B, 2), 16))
    tile_b = max(16, _round_up(tile_b, 16))
    B_pad = _round_up(B, tile_b)

    # Only pad the batch when tile_b does not divide B (no-op otherwise).
    xp = x if B_pad == B else jnp.pad(x, ((0, B_pad - B), (0, 0)))

    grid = (B_pad // tile_b,)

    def const_spec(shape):
        # Parameters: same (whole-array) block for every grid step ->
        # DMA'd once and held resident in VMEM across the grid.
        return pl.BlockSpec(shape, lambda i: (0,) * len(shape))

    in_specs = [
        pl.BlockSpec((tile_b, F), lambda i: (i, 0)),   # x: tiled over batch
        const_spec(w1.shape), const_spec(b1.shape),
        const_spec(w2.shape), const_spec(b2.shape),
        const_spec(w3.shape), const_spec(b3.shape),
        const_spec(w4.shape), const_spec(b4.shape),
    ]
    out_spec = pl.BlockSpec((tile_b, Dp), lambda i: (i, 0))

    flops = 2 * B_pad * (F * H1p + H1p * H2p + H2p * H3p + H3p * Dp)
    bytes_accessed = (
        int(xp.size) * 4                      # x read (f32)
        + B_pad * Dp * 2                      # output write (bf16)
        + sum(int(w.size) * 2 for w in (w1, w2, w3, w4))
        + sum(int(b.size) * 4 for b in (b1, b2, b3, b4)))

    out = pl.pallas_call(
        _mlp_kernel,
        out_shape=jax.ShapeDtypeStruct((B_pad, Dp), jnp.bfloat16),
        grid=grid,
        in_specs=in_specs,
        out_specs=out_spec,
        compiler_params=pltpu.CompilerParams(
            dimension_semantics=("parallel",),
            vmem_limit_bytes=16 * 1024 * 1024,
        ),
        cost_estimate=pl.CostEstimate(
            flops=flops, transcendentals=0, bytes_accessed=bytes_accessed),
    )(xp, w1, b1, w2, b2, w3, b3, w4, b4)

    # Slice the real rows/columns and return f32 like the PyTorch module.
    return out[:B, :out_dim].astype(jnp.float32)


def init_params(key, num_feat, num_diseases):
    """Deterministic init mimicking nn.Linear's U(-1/sqrt(fan_in), +1/sqrt(fan_in))."""
    dims = [num_feat, num_feat * 3, num_feat * 5, num_feat * 3, num_diseases]
    params = {}
    keys = jax.random.split(key, 8)
    for li in range(4):
        fan_in, fan_out = dims[li], dims[li + 1]
        bound = 1.0 / jnp.sqrt(jnp.float32(fan_in))
        w = jax.random.uniform(keys[2 * li], (fan_in, fan_out),
                               minval=-bound, maxval=bound, dtype=jnp.float32)
        b = jax.random.uniform(keys[2 * li + 1], (1, fan_out),
                               minval=-bound, maxval=bound, dtype=jnp.float32)
        params[f"w{li + 1}"] = w
        params[f"b{li + 1}"] = b
    return params


def reference_forward(x, params):
    """Pure-JAX reference with matching bf16-operand / f32-accumulate numerics."""
    def layer(h, w, b):
        y = jnp.dot(h.astype(jnp.bfloat16), w.astype(jnp.bfloat16),
                    preferred_element_type=jnp.float32) + b
        return jnp.maximum(y, 0.0)

    h = layer(x, params["w1"], params["b1"])
    h = layer(h, params["w2"], params["b2"])
    h = layer(h, params["w3"], params["b3"])
    h = layer(h, params["w4"], params["b4"])   # final relu, same as module
    # Kernel stores bf16 then the wrapper upcasts; mirror that rounding.
    return h.astype(jnp.bfloat16).astype(jnp.float32)


if __name__ == "__main__":
    num_feat = 32        # -> hidden sizes 96, 160, 96 (padded 128, 256, 128)
    num_diseases = 16    # output padded to 128 lanes, sliced back to 16
    batch = 8

    key = jax.random.PRNGKey(0)
    k_x, k_p = jax.random.split(key)
    x = jax.random.normal(k_x, (batch, num_feat), dtype=jnp.float32)
    params = init_params(k_p, num_feat, num_diseases)

    prep = prepare_params(params)          # one-time pad/cast, off the hot path
    out = fcnn_surv_time(x, prep, num_diseases)
    out = jax.block_until_ready(out)

    ref = reference_forward(x, params)
    assert out.shape == (batch, num_diseases)
    assert jnp.allclose(out, ref, atol=1e-2, rtol=1e-2)

    print("KERNEL_OK")
</pallas_src>

<mosaic_0001>
module attributes {stable_mosaic.version = 11 : i64} {
  func.func @_mlp_kernel(%arg0: i32, %arg1: memref<16x32xf32, #tpu.memory_space<vmem>>, %arg2: memref<32x128xbf16, #tpu.memory_space<vmem>>, %arg3: memref<1x128xf32, #tpu.memory_space<vmem>>, %arg4: memref<128x256xbf16, #tpu.memory_space<vmem>>, %arg5: memref<1x256xf32, #tpu.memory_space<vmem>>, %arg6: memref<256x128xbf16, #tpu.memory_space<vmem>>, %arg7: memref<1x128xf32, #tpu.memory_space<vmem>>, %arg8: memref<128x128xbf16, #tpu.memory_space<vmem>>, %arg9: memref<1x128xf32, #tpu.memory_space<vmem>>, %arg10: memref<16x128xbf16, #tpu.memory_space<vmem>>) attributes {dimension_semantics = [#tpu.dimension_semantics<parallel>], iteration_bounds = array<i64: 1>, scalar_prefetch = 0 : i64, scratch_operands = 0 : i64, tpu.core_type = #tpu.core_type<tc>, window_params = [{transform_indices = @transform_0, window_bounds = array<i64: 16, 32>}, {pipeline_mode = #tpu.pipeline_mode<synchronous>, transform_indices = @transform_1, window_bounds = array<i64: 32, 128>}, {pipeline_mode = #tpu.pipeline_mode<synchronous>, transform_indices = @transform_2, window_bounds = array<i64: 1, 128>}, {pipeline_mode = #tpu.pipeline_mode<synchronous>, transform_indices = @transform_3, window_bounds = array<i64: 128, 256>}, {pipeline_mode = #tpu.pipeline_mode<synchronous>, transform_indices = @transform_4, window_bounds = array<i64: 1, 256>}, {pipeline_mode = #tpu.pipeline_mode<synchronous>, transform_indices = @transform_5, window_bounds = array<i64: 256, 128>}, {pipeline_mode = #tpu.pipeline_mode<synchronous>, transform_indices = @transform_6, window_bounds = array<i64: 1, 128>}, {pipeline_mode = #tpu.pipeline_mode<synchronous>, transform_indices = @transform_7, window_bounds = array<i64: 128, 128>}, {pipeline_mode = #tpu.pipeline_mode<synchronous>, transform_indices = @transform_8, window_bounds = array<i64: 1, 128>}, {transform_indices = @transform_9, window_bounds = array<i64: 16, 128>}]} {
    %c0 = arith.constant 0 : index
    %c0_0 = arith.constant 0 : index
    %0 = vector.load %arg1[%c0, %c0_0] : memref<16x32xf32, #tpu.memory_space<vmem>>, vector<16x32xf32>
    %1 = arith.truncf %0 : vector<16x32xf32> to vector<16x32xbf16>
    %c0_1 = arith.constant 0 : index
    %c0_2 = arith.constant 0 : index
    %2 = vector.load %arg2[%c0_1, %c0_2] : memref<32x128xbf16, #tpu.memory_space<vmem>>, vector<32x128xbf16>
    %cst = arith.constant dense<0.000000e+00> : vector<16x128xf32>
    %3 = tpu.matmul %1, %2, %cst {dimension_numbers = #tpu.dot_dimension_numbers<[1], [0], [0], [1], [0, 0, 1, 1], [], []>} : vector<16x32xbf16>, vector<32x128xbf16>, vector<16x128xf32> -> vector<16x128xf32>
    %c0_3 = arith.constant 0 : index
    %c0_4 = arith.constant 0 : index
    %4 = vector.load %arg3[%c0_3, %c0_4] : memref<1x128xf32, #tpu.memory_space<vmem>>, vector<1x128xf32>
    %5 = vector.broadcast %4 : vector<1x128xf32> to vector<16x128xf32>
    %6 = arith.addf %3, %5 : vector<16x128xf32>
    %cst_5 = arith.constant 0.000000e+00 : f32
    %7 = vector.broadcast %cst_5 : f32 to vector<16x128xf32>
    %8 = arith.maximumf %6, %7 : vector<16x128xf32>
    %9 = arith.truncf %8 : vector<16x128xf32> to vector<16x128xbf16>
    %c0_6 = arith.constant 0 : index
    %c0_7 = arith.constant 0 : index
    %10 = vector.load %arg4[%c0_6, %c0_7] : memref<128x256xbf16, #tpu.memory_space<vmem>>, vector<128x256xbf16>
    %cst_8 = arith.constant dense<0.000000e+00> : vector<16x256xf32>
    %11 = tpu.matmul %9, %10, %cst_8 {dimension_numbers = #tpu.dot_dimension_numbers<[1], [0], [0], [1], [0, 0, 1, 1], [], []>} : vector<16x128xbf16>, vector<128x256xbf16>, vector<16x256xf32> -> vector<16x256xf32>
    %c0_9 = arith.constant 0 : index
    %c0_10 = arith.constant 0 : index
    %12 = vector.load %arg5[%c0_9, %c0_10] : memref<1x256xf32, #tpu.memory_space<vmem>>, vector<1x256xf32>
    %13 = vector.broadcast %12 : vector<1x256xf32> to vector<16x256xf32>
    %14 = arith.addf %11, %13 : vector<16x256xf32>
    %cst_11 = arith.constant 0.000000e+00 : f32
    %15 = vector.broadcast %cst_11 : f32 to vector<16x256xf32>
    %16 = arith.maximumf %14, %15 : vector<16x256xf32>
    %17 = arith.truncf %16 : vector<16x256xf32> to vector<16x256xbf16>
    %c0_12 = arith.constant 0 : index
    %c0_13 = arith.constant 0 : index
    %18 = vector.load %arg6[%c0_12, %c0_13] : memref<256x128xbf16, #tpu.memory_space<vmem>>, vector<256x128xbf16>
    %cst_14 = arith.constant dense<0.000000e+00> : vector<16x128xf32>
    %19 = tpu.matmul %17, %18, %cst_14 {dimension_numbers = #tpu.dot_dimension_numbers<[1], [0], [0], [1], [0, 0, 1, 1], [], []>} : vector<16x256xbf16>, vector<256x128xbf16>, vector<16x128xf32> -> vector<16x128xf32>
    %c0_15 = arith.constant 0 : index
    %c0_16 = arith.constant 0 : index
    %20 = vector.load %arg7[%c0_15, %c0_16] : memref<1x128xf32, #tpu.memory_space<vmem>>, vector<1x128xf32>
    %21 = vector.broadcast %20 : vector<1x128xf32> to vector<16x128xf32>
    %22 = arith.addf %19, %21 : vector<16x128xf32>
    %cst_17 = arith.constant 0.000000e+00 : f32
    %23 = vector.broadcast %cst_17 : f32 to vector<16x128xf32>
    %24 = arith.maximumf %22, %23 : vector<16x128xf32>
    %25 = arith.truncf %24 : vector<16x128xf32> to vector<16x128xbf16>
    %c0_18 = arith.constant 0 : index
    %c0_19 = arith.constant 0 : index
    %26 = vector.load %arg8[%c0_18, %c0_19] : memref<128x128xbf16, #tpu.memory_space<vmem>>, vector<128x128xbf16>
    %cst_20 = arith.constant dense<0.000000e+00> : vector<16x128xf32>
    %27 = tpu.matmul %25, %26, %cst_20 {dimension_numbers = #tpu.dot_dimension_numbers<[1], [0], [0], [1], [0, 0, 1, 1], [], []>} : vector<16x128xbf16>, vector<128x128xbf16>, vector<16x128xf32> -> vector<16x128xf32>
    %c0_21 = arith.constant 0 : index
    %c0_22 = arith.constant 0 : index
    %28 = vector.load %arg9[%c0_21, %c0_22] : memref<1x128xf32, #tpu.memory_space<vmem>>, vector<1x128xf32>
    %29 = vector.broadcast %28 : vector<1x128xf32> to vector<16x128xf32>
    %30 = arith.addf %27, %29 : vector<16x128xf32>
    %cst_23 = arith.constant 0.000000e+00 : f32
    %31 = vector.broadcast %cst_23 : f32 to vector<16x128xf32>
    %32 = arith.maximumf %30, %31 : vector<16x128xf32>
    %33 = arith.truncf %32 : vector<16x128xf32> to vector<16x128xbf16>
    %c0_24 = arith.constant 0 : index
    %c0_25 = arith.constant 0 : index
    %34 = vector.load %arg10[%c0_24, %c0_25] : memref<16x128xbf16, #tpu.memory_space<vmem>>, vector<16x128xbf16>
    tpu.vector_store %arg10[%c0_24, %c0_25], %33 {strides = array<i32>} : memref<16x128xbf16, #tpu.memory_space<vmem>>, vector<16x128xbf16>,
    return
  }
  func.func @transform_0(%arg0: i32) -> (i32, i32) {
    %c0_i32 = arith.constant 0 : i32
    %c0_i32_0 = arith.constant 0 : i32
    return %arg0, %c0_i32 : i32, i32
  }
  func.func @transform_1(%arg0: i32) -> (i32, i32) {
    %c0_i32 = arith.constant 0 : i32
    %c0_i32_0 = arith.constant 0 : i32
    %c0_i32_1 = arith.constant 0 : i32
    return %c0_i32, %c0_i32_0 : i32, i32
  }
  func.func @transform_2(%arg0: i32) -> (i32, i32) {
    %c0_i32 = arith.constant 0 : i32
    %c0_i32_0 = arith.constant 0 : i32
    %c0_i32_1 = arith.constant 0 : i32
    return %c0_i32, %c0_i32_0 : i32, i32
  }
  func.func @transform_3(%arg0: i32) -> (i32, i32) {
    %c0_i32 = arith.constant 0 : i32
    %c0_i32_0 = arith.constant 0 : i32
    %c0_i32_1 = arith.constant 0 : i32
    return %c0_i32, %c0_i32_0 : i32, i32
  }
  func.func @transform_4(%arg0: i32) -> (i32, i32) {
    %c0_i32 = arith.constant 0 : i32
    %c0_i32_0 = arith.constant 0 : i32
    %c0_i32_1 = arith.constant 0 : i32
    return %c0_i32, %c0_i32_0 : i32, i32
  }
  func.func @transform_5(%arg0: i32) -> (i32, i32) {
    %c0_i32 = arith.constant 0 : i32
    %c0_i32_0 = arith.constant 0 : i32
    %c0_i32_1 = arith.constant 0 : i32
    return %c0_i32, %c0_i32_0 : i32, i32
  }
  func.func @transform_6(%arg0: i32) -> (i32, i32) {
    %c0_i32 = arith.constant 0 : i32
    %c0_i32_0 = arith.constant 0 : i32
    %c0_i32_1 = arith.constant 0 : i32
    return %c0_i32, %c0_i32_0 : i32, i32
  }
  func.func @transform_7(%arg0: i32) -> (i32, i32) {
    %c0_i32 = arith.constant 0 : i32
    %c0_i32_0 = arith.constant 0 : i32
    %c0_i32_1 = arith.constant 0 : i32
    return %c0_i32, %c0_i32_0 : i32, i32
  }
  func.func @transform_8(%arg0: i32) -> (i32, i32) {
    %c0_i32 = arith.constant 0 : i32
    %c0_i32_0 = arith.constant 0 : i32
    %c0_i32_1 = arith.constant 0 : i32
    return %c0_i32, %c0_i32_0 : i32, i32
  }
  func.func @transform_9(%arg0: i32) -> (i32, i32) {
    %c0_i32 = arith.constant 0 : i32
    %c0_i32_0 = arith.constant 0 : i32
    return %arg0, %c0_i32 : i32, i32
  }
}

</mosaic_0001>

<bundles_post_ra>
// kernel: tpu_custom_call.1
= control target key start
LH: loop header
LB: loop body
LE: loop exit
PB: predicated region body
PF: predicated region fallthrough
CT: control target
= control target key end

     0   :  { %14 = vsyncpa [#allocation3], 0  ;;  %s1047_s0 = inlined_call_operand.hbm [shape: f32[16,32], index: 0, kind: input, shape index: {}]   ;;  %s1048_s1 = inlined_call_operand.hbm [shape: bf16[32,128], index: 1, kind: input, shape index: {}]   ;;  %s1049_s2 = inlined_call_operand.vmem [shape: f32[1,128], index: 2, kind: input, shape index: {}]   ;;  %s1050_s3 = inlined_call_operand.hbm [shape: bf16[128,256], index: 3, kind: input, shape index: {}]   ;;  %s1051_s4 = inlined_call_operand.vmem [shape: f32[1,256], index: 4, kind: input, shape index: {}]   ;;  %s1052_s5 = inlined_call_operand.hbm [shape: bf16[256,128], index: 5, kind: input, shape index: {}]   ;;  %s1053_s6 = inlined_call_operand.vmem [shape: f32[1,128], index: 6, kind: input, shape index: {}]   ;;  %s1054_s7 = inlined_call_operand.hbm [shape: bf16[128,128], index: 7, kind: input, shape index: {}]   ;;  %s1055_s8 = inlined_call_operand.vmem [shape: f32[1,128], index: 8, kind: input, shape index: {}]   ;;  %s1056_s9 = inlined_call_operand.hbm [shape: bf16[16,128], index: 9, kind: output, shape index: {}]  }
   0x1   :  { %15 = vsyncpa [#allocation6], 0 }
   0x2   :  { %16 = vsyncpa [#allocation9], 0  ;;  %s35_s11 = sshll.u32 %s1048_s1, 4  ;;  %s36_s11 = int_to_ptr.hbm [resolvable:$true] %s35_s11 }
   0x3   :  { %17 = vsyncpa [#allocation4], 0  ;;  %s945_s12 = smov [#allocation5]   ;;  %s65_s16 = sshll.u32 %s1052_s5, 4  ;;  %s66_s16 = int_to_ptr.hbm [resolvable:$true] %s65_s16 }
   0x4   :  { %s37_s13 = sshll.u32 %s945_s12, 4  ;;  %s946_s17 = smov 64   ;;  %s38_s13 = int_to_ptr.vmem [resolvable:$true] %s37_s13 }
   0x5   :  { %s947_s18 = smov 4   ;;  %s948_s19 = smov [#allocation8]  }
   0x6   :  { %43 = dma.hbm_to_vmem [thread:$0]  %s36_s11, 256, %s38_s13, [#allocation6], %s946_s17, %s946_s17, %s947_s18  }
   0x7   :  { %s67_s20 = sshll.u32 %s948_s19, 4  ;;  %s22_s22 = sshll.u32 %s1047_s0, 4  ;;  %s68_s20 = int_to_ptr.vmem [resolvable:$true] %s67_s20  ;;  %s23_s22 = int_to_ptr.hbm [resolvable:$true] %s22_s22 }
   0x8   :  { %73 = dma.hbm_to_vmem [thread:$0]  %s66_s16, 2048, %s68_s20, [#allocation9], %s946_s17, %s946_s17, %s947_s18  }
   0x9   :  { %s949_s5 = smov [#allocation2]   ;;  %s50_s26 = sshll.u32 %s1050_s3, 4  ;;  %s51_s26 = int_to_ptr.hbm [resolvable:$true] %s50_s26 }
   0xa   :  { %s24_s23 = sshll.u32 %s949_s5, 4  ;;  %s950_s27 = smov 128   ;;  %s25_s23 = int_to_ptr.vmem [resolvable:$true] %s24_s23 }
   0xb   :  { %s951_s28 = smov 8   ;;  %s952_s29 = smov [#allocation7]  }
   0xc   :  { %30 = dma.hbm_to_vmem [thread:$0]  %s23_s22, 256, %s25_s23, [#allocation3], %s950_s27, %s950_s27, %s951_s28  }
   0xd   :  { %s52_s30 = sshll.u32 %s952_s29, 4  ;;  %s80_s11 = sshll.u32 %s1054_s7, 4  ;;  %s53_s30 = int_to_ptr.vmem [resolvable:$true] %s52_s30  ;;  %s81_s11 = int_to_ptr.hbm [resolvable:$true] %s80_s11 }
   0xe   :  { %58 = dma.hbm_to_vmem [thread:$0]  %s51_s26, 2048, %s53_s30, [#allocation6], %s950_s27, %s950_s27, %s951_s28  }
   0xf   :  { %s953_s12 = smov [#allocation10]  }
  0x10   :  { %s82_s13 = sshll.u32 %s953_s12, 4  ;;  %s83_s13 = int_to_ptr.vmem [resolvable:$true] %s82_s13 }
  0x11   :  { %88 = dma.hbm_to_vmem [thread:$0]  %s81_s11, 1024, %s83_s13, [#allocation9], %s946_s17, %s946_s17, %s947_s18  }
  0x12   :  { %937 = dma.done.wait [#allocation3], 256  }
  0x13   :  { %938 = vsyncadd [#allocation3], 4294967040 }
  0x14   :  { %939 = dma.done.wait [#allocation6], 2304  }
  0x15   :  { %940 = vsyncadd [#allocation6], 4294964992 }
  0x16   :  { %941 = dma.done.wait [#allocation9], 3072  }
  0x17   :  { %942 = vsyncadd [#allocation9], 4294964224  ;;  %v734_v0 = vld [vmem:[#allocation5 + $0x8] sm:$0xff]  ;;  %v733_v1 = vld [vmem:[#allocation5] sm:$0xff]  ;;  %vm135_vm0 = vcmask 261120   ;;  %s954_s20 = smov [#allocation11]  }
  0x18   :  { %v112_v2 = vld [vmem:[#allocation2] sm:$0xff]  ;;  %v113_v3 = vld [vmem:[#allocation2 + $0x8] sm:$0xff]  ;;  %v631_v4 = vld [vmem:[#allocation7 + $0x70] sm:$0xf]  ;;  %145 = vmatpush.bf16.msra.mxu0 %v734_v0  ;;  %s549_s22 = sshll.u32 %s1056_s9, 4  ;;  %s550_s22 = int_to_ptr.hbm [resolvable:$true] %s549_s22 }
  0x19   :  { %v750_v5 = vld [vmem:[#allocation7 + $0x74] sm:$0xf0]  ;;  %v749_v7 = vld [vmem:[#allocation7 + $0x74] sm:$0xf]  ;;  %v633_v8 = vld [vmem:[#allocation7 + $0x78] sm:$0xf0]  ;;  %v114_v15 = vpack.c.bf16 %v113_v3, %v112_v2 }
  0x1a   :  { %v632_v6 = vor.u32 %v750_v5, %v631_v4  ;;  %v623_v9 = vld [vmem:[#allocation7 + $0x60] sm:$0xf]  ;;  %v636_v10 = vor.u32 %v749_v7, %v633_v8  ;;  %v748_v11 = vld [vmem:[#allocation7 + $0x64] sm:$0xf0]  ;;  %v747_v12 = vld [vmem:[#allocation7 + $0x64] sm:$0xf] }
  0x1b   :  { %v625_v13 = vld [vmem:[#allocation7 + $0x68] sm:$0xf0]  ;;  %v624_v14 = vor.u32 %v748_v11, %v623_v9  ;;  %v615_v17 = vld [vmem:[#allocation7 + $0x50] sm:$0xf]  ;;  %v746_v18 = vld [vmem:[#allocation7 + $0x54] sm:$0xf0] }
  0x1c   :  { %258 = vmatpush.bf16.msra.mxu1 %v632_v6  ;;  %272 = vmatpush.bf16.msra.mxu2 %v636_v10  ;;  %v628_v16 = vor.u32 %v747_v12, %v625_v13  ;;  %v745_v19 = vld [vmem:[#allocation7 + $0x54] sm:$0xf]  ;;  %v617_v20 = vld [vmem:[#allocation7 + $0x58] sm:$0xf0]  ;;  %v616_v21 = vor.u32 %v746_v18, %v615_v17  ;;  %v607_v23 = vld [vmem:[#allocation7 + $0x40] sm:$0xf] }
  0x1d   :  { %146 = vmatpush.bf16.msra.mxu0 %v733_v1  ;;  %v620_v22 = vor.u32 %v745_v19, %v617_v20  ;;  %v744_v24 = vld [vmem:[#allocation7 + $0x44] sm:$0xf0]  ;;  %v743_v25 = vld [vmem:[#allocation7 + $0x44] sm:$0xf]  ;;  %v609_v26 = vld [vmem:[#allocation7 + $0x48] sm:$0xf0] }
  0x1e   :  { %v608_v27 = vor.u32 %v744_v24, %v607_v23  ;;  %v612_v28 = vor.u32 %v743_v25, %v609_v26  ;;  %v599_v29 = vld [vmem:[#allocation7 + $0x30] sm:$0xf]  ;;  %v742_v30 = vld [vmem:[#allocation7 + $0x34] sm:$0xf0]  ;;  %v741_v31 = vld [vmem:[#allocation7 + $0x34] sm:$0xf] }
  0x1f   :  { %v600_v32 = vor.u32 %v742_v30, %v599_v29  ;;  %v601_v33 = vld [vmem:[#allocation7 + $0x38] sm:$0xf0]  ;;  %v591_v35 = vld [vmem:[#allocation7 + $0x20] sm:$0xf]  ;;  %v740_v36 = vld [vmem:[#allocation7 + $0x24] sm:$0xf0] }
  0x20   :  { %259 = vmatpush.bf16.msra.mxu1 %v624_v14  ;;  %572 = vmatmul.msk.bf16.vlgmr.msra.gmra.mxu0 %vm135_vm0, %v114_v15  ;;  %v604_v34 = vor.u32 %v741_v31, %v601_v33  ;;  %v739_v37 = vld [vmem:[#allocation7 + $0x24] sm:$0xf]  ;;  %v592_v38 = vor.u32 %v740_v36, %v591_v35  ;;  %v593_v39 = vld [vmem:[#allocation7 + $0x28] sm:$0xf0]  ;;  %v583_v41 = vld [vmem:[#allocation7 + $0x10] sm:$0xf] }
  0x21   :  { %273 = vmatpush.bf16.msra.mxu2 %v628_v16  ;;  %v596_v40 = vor.u32 %v739_v37, %v593_v39  ;;  %v738_v42 = vld [vmem:[#allocation7 + $0x14] sm:$0xf0]  ;;  %v737_v43 = vld [vmem:[#allocation7 + $0x14] sm:$0xf]  ;;  %v585_v45 = vld [vmem:[#allocation7 + $0x18] sm:$0xf0] }
  0x22   :  { %v584_v44 = vor.u32 %v738_v42, %v583_v41  ;;  %v588_v46 = vor.u32 %v737_v43, %v585_v45  ;;  %v575_v47 = vld [vmem:[#allocation7] sm:$0xf]  ;;  %v736_v48 = vld [vmem:[#allocation7 + $0x4] sm:$0xf0]  ;;  %v735_v49 = vld [vmem:[#allocation7 + $0x4] sm:$0xf] }
  0x23   :  { %v576_v50 = vor.u32 %v736_v48, %v575_v47  ;;  %v577_v51 = vld [vmem:[#allocation7 + $0x8] sm:$0xf0]  ;;  %v758_v53 = vld [vmem:[#allocation8 + $0x38] sm:$0xff]  ;;  %v757_v55 = vld [vmem:[#allocation8 + $0x30] sm:$0xff] }
  0x24   :  { %260 = vmatpush.bf16.msra.mxu1 %v616_v21  ;;  %v580_v52 = vor.u32 %v735_v49, %v577_v51  ;;  %v766_v54 = vld [vmem:[#allocation8 + $0x78] sm:$0xff]  ;;  %424 = vmatpush.bf16.msra.mxu3 %v758_v53  ;;  %v765_v56 = vld [vmem:[#allocation8 + $0x70] sm:$0xff]  ;;  %v756_v57 = vld [vmem:[#allocation8 + $0x28] sm:$0xff] }
  0x25   :  { %274 = vmatpush.bf16.msra.mxu2 %v620_v22  ;;  %438 = vmatpush.bf16.msrb.mxu0 %v766_v54  ;;  %v764_v58 = vld [vmem:[#allocation8 + $0x68] sm:$0xff]  ;;  %v755_v59 = vld [vmem:[#allocation8 + $0x20] sm:$0xff]  ;;  %v754_v4 = vld [vmem:[#allocation8 + $0x18] sm:$0xff] }
  0x26   :  { %v790_v61 = vld [vmem:[%s1049_s2] ss:$0 sm:$0xff]  ;;  %v753_v6 = vld [vmem:[#allocation8 + $0x10] sm:$0xff]  ;;  %v762_v7 = vld [vmem:[#allocation8 + $0x58] sm:$0xff] }
  0x27   :  { %v763_v5 = vld [vmem:[#allocation8 + $0x60] sm:$0xff]  ;;  %v752_v8 = vld [vmem:[#allocation8 + $0x8] sm:$0xff]  ;;  %v761_v9 = vld [vmem:[#allocation8 + $0x50] sm:$0xff] }
  0x28   :  { %261 = vmatpush.bf16.msra.mxu1 %v608_v27  ;;  %425 = vmatpush.bf16.msra.mxu3 %v757_v55  ;;  %v751_v10 = vld [vmem:[#allocation8] sm:$0xff]  ;;  %v760_v11 = vld [vmem:[#allocation8 + $0x48] sm:$0xff]  ;;  %v774_v13 = vld [vmem:[#allocation10 + $0x38] sm:$0xff] }
  0x29   :  { %275 = vmatpush.bf16.msra.mxu2 %v612_v28  ;;  %439 = vmatpush.bf16.msrb.mxu0 %v765_v56  ;;  %v759_v12 = vld [vmem:[#allocation8 + $0x40] sm:$0xff]  ;;  %v773_v14 = vld [vmem:[#allocation10 + $0x30] sm:$0xff]  ;;  %v772_v15 = vld [vmem:[#allocation10 + $0x28] sm:$0xff] }
  0x2a   :  { %v771_v16 = vld [vmem:[#allocation10 + $0x20] sm:$0xff]  ;;  %v769_v35 = vld [vmem:[#allocation10 + $0x10] sm:$0xff]  ;;  %v768_v36 = vld [vmem:[#allocation10 + $0x8] sm:$0xff] }
  0x2b   :  { %v172_v17 = vld [vmem:[%s1051_s4] sm:$0x3] }
  0x2c   :  { %262 = vmatpush.bf16.msra.mxu1 %v600_v32  ;;  %426 = vmatpush.bf16.msra.mxu3 %v756_v57  ;;  %v174_v19 = vperm.slane %v172_v17, 0  ;;  %v175_v23 = vperm.slane %v172_v17, 1  ;;  %v767_v37 = vld [vmem:[#allocation10] sm:$0xff] }
  0x2d   :  { %276 = vmatpush.bf16.msra.mxu2 %v604_v34  ;;  %440 = vmatpush.bf16.msrb.mxu0 %v764_v58  ;;  %v770_v34 = vld [vmem:[#allocation10 + $0x18] sm:$0xff]  ;;  %v792_v51 = vld [vmem:[%s1055_s8] ss:$0 sm:$0xff] }
  0x30   :  { %263 = vmatpush.bf16.msra.mxu1 %v592_v38  ;;  %427 = vmatpush.bf16.msra.mxu3 %v755_v59 }
  0x31   :  { %277 = vmatpush.bf16.msra.mxu2 %v596_v40  ;;  %441 = vmatpush.bf16.msrb.mxu0 %v763_v5  ;;  %v791_v40 = vld [vmem:[%s1053_s6] ss:$0 sm:$0xff]  ;;  %s547_s6 = sshll.u32 %s954_s20, 4  ;;  %s548_s6 = int_to_ptr.vmem [resolvable:$true] %s547_s6 }
  0x34   :  { %264 = vmatpush.bf16.msra.mxu1 %v584_v44  ;;  %428 = vmatpush.bf16.msra.mxu3 %v754_v4 }
  0x35   :  { %278 = vmatpush.bf16.msra.mxu2 %v588_v46  ;;  %442 = vmatpush.bf16.msrb.mxu0 %v762_v7 }
  0x38   :  { %265 = vmatpush.bf16.msra.mxu1 %v576_v50  ;;  %429 = vmatpush.bf16.msra.mxu3 %v753_v6 }
  0x39   :  { %279 = vmatpush.bf16.msra.mxu2 %v580_v52  ;;  %443 = vmatpush.bf16.msrb.mxu0 %v761_v9 }
  0x3c   :  { %430 = vmatpush.bf16.msra.mxu3 %v752_v8  ;;  %523 = vmatpush.bf16.msrb.mxu1 %v774_v13 }
  0x3d   :  { %444 = vmatpush.bf16.msrb.mxu0 %v760_v11 }
  0x40   :  { %431 = vmatpush.bf16.msra.mxu3 %v751_v10  ;;  %524 = vmatpush.bf16.msrb.mxu1 %v773_v14 }
  0x41   :  { %445 = vmatpush.bf16.msrb.mxu0 %v759_v12 }
  0x44   :  { %525 = vmatpush.bf16.msrb.mxu1 %v772_v15 }
  0x48   :  { %526 = vmatpush.bf16.msrb.mxu1 %v771_v16 }
  0x4c   :  { %527 = vmatpush.bf16.msrb.mxu1 %v770_v34 }
  0x50   :  { %528 = vmatpush.bf16.msrb.mxu1 %v769_v35 }
  0x54   :  { %529 = vmatpush.bf16.msrb.mxu1 %v768_v36 }
  0x58   :  { %530 = vmatpush.bf16.msrb.mxu1 %v767_v37 }
  0x9d   :  { %v148_v60 = vpop.f32.mrf.mxu0 }
  0x9e   :  { %v149_v62 = vadd.f32 %v790_v61, %v148_v60 }
  0xa0   :  { %v153_v1 = vmax.f32 %v149_v62, 0.0 }
  0xa5   :  { %v150_v63 = vpop.f32.mrf.mxu0 }
  0xa6   :  { %v151_v0 = vadd.f32 %v790_v61, %v150_v63 }
  0xa8   :  { %v154_v2 = vmax.f32 %v151_v0, 0.0 }
  0xaa   :  { %v155_v3 = vpack.c.bf16 %v154_v2, %v153_v1 }
  0xac   :  { %266 = vmatmul.bf16.vlgmr.msra.gmra.mxu1 %v155_v3  ;;  %280 = vmatmul.bf16.vlgmr.msra.gmra.mxu2 %v155_v3 }
 0x129   :  { %v267_v18 = vpop.f32.mrf.mxu1 }
 0x12a   :  { %v268_v21 = vadd.f32 %v267_v18, %v174_v19 }
 0x12c   :  { %v286_v25 = vmax.f32 %v268_v21, 0.0 }
 0x12f   :  { %v281_v20 = vpop.f32.mrf.mxu2 }
 0x130   :  { %v282_v27 = vadd.f32 %v281_v20, %v175_v23 }
 0x131   :  { %v269_v22 = vpop.f32.mrf.mxu1 }
 0x132   :  { %v270_v24 = vadd.f32 %v269_v22, %v174_v19  ;;  %v287_v31 = vmax.f32 %v282_v27, 0.0 }
 0x134   :  { %v288_v26 = vmax.f32 %v270_v24, 0.0 }
 0x136   :  { %v290_v28 = vpack.c.bf16 %v288_v26, %v286_v25 }
 0x137   :  { %v283_v29 = vpop.f32.mrf.mxu2 }
 0x138   :  { %v284_v30 = vadd.f32 %v283_v29, %v175_v23  ;;  %432 = vmatmul.bf16.vlgmr.msra.gmra.mxu3 %v290_v28 }
 0x13a   :  { %v289_v32 = vmax.f32 %v284_v30, 0.0 }
 0x13c   :  { %v291_v33 = vpack.c.bf16 %v289_v32, %v287_v31 }
 0x13e   :  { %446 = vmatmul.bf16.vlgmr.msrb.gmra.mxu0 %v291_v33 }
 0x1bb   :  { %v433_v38 = vpop.f32.mrf.mxu3  ;;  %v447_v39 = vpop.f32.mrf.mxu0 }
 0x1bc   :  { %v434_v41 = vadd.f32 %v791_v40, %v433_v38 }
 0x1be   :  { %v448_v43 = vadd.f32 %v447_v39, %v434_v41 }
 0x1c0   :  { %v452_v47 = vmax.f32 %v448_v43, 0.0 }
 0x1c3   :  { %v435_v42 = vpop.f32.mrf.mxu3  ;;  %v449_v45 = vpop.f32.mrf.mxu0 }
 0x1c4   :  { %v436_v44 = vadd.f32 %v791_v40, %v435_v42 }
 0x1c6   :  { %v450_v46 = vadd.f32 %v449_v45, %v436_v44 }
 0x1c8   :  { %v453_v48 = vmax.f32 %v450_v46, 0.0 }
 0x1ca   :  { %v454_v49 = vpack.c.bf16 %v453_v48, %v452_v47 }
 0x1cc   :  { %531 = vmatmul.bf16.vlgmr.msrb.gmra.mxu1 %v454_v49 }
 0x249   :  { %v532_v50 = vpop.f32.mrf.mxu1 }
 0x24a   :  { %v533_v52 = vadd.f32 %v792_v51, %v532_v50 }
 0x24c   :  { %v537_v55 = vmax.f32 %v533_v52, 0.0 }
 0x251   :  { %v534_v53 = vpop.f32.mrf.mxu1 }
 0x252   :  { %v535_v54 = vadd.f32 %v792_v51, %v534_v53 }
 0x254   :  { %v538_v56 = vmax.f32 %v535_v54, 0.0 }
 0x256   :  { %v778_v57 = vpack.c.bf16 %v538_v56, %v537_v55 }
 0x258   :  { %779 = vst [vmem:[#allocation11] sm:$0xff] %v778_v57  }
 0x259   :  { %555 = dma.vmem_to_hbm [thread:$0]  %s548_s6, 128, %s550_s22, [#allocation4], %s946_s17, %s946_s17, %s947_s18  }
 0x25a   :  { %943 = dma.done.wait [#allocation4], 128  }
 0x25b   :  { %944 = vsyncadd [#allocation4], 4294967168 }
 0x25c   :  { %560 = vsyncpa [#allocation3], 1 }
 0x25d   :  { %561 = vsyncpa [#allocation6], 1 }
 0x25e   :  { %562 = vsyncpa [#allocation9], 1 }
 0x25f   :  { %563 = vsyncpa [#allocation4], 1 }

</bundles_post_ra>
